<compile_context>
chip_gen: v6e
topology: v6e:2x2x1
jax: 0.10.0
libtpu: 0.0.40
codegen_flags: <defaults>
</compile_context>

<pallas_src>
import jax
import jax.numpy as jnp
from jax.experimental import pallas as pl
from jax.experimental.pallas import tpu as pltpu


LAMBDA_SMOOTH = 0.1


def _fold_rows(x):
    """Reduce (M, W) -> (8, W) with sublane-preserving VPU adds only."""
    m, w = x.shape
    pad = (-m) % 8
    if pad:
        x = jnp.concatenate([x, jnp.zeros((pad, w), x.dtype)], axis=0)
    return x.reshape(-1, 8, w).sum(axis=0)


def _photometric_loss_kernel(tgt_ref, warped_ref, disp_ref, out_ref,
                             dprev_ref, tprev_ref):
    """One (batch, H-tile) step: accumulate lane-dense partial sums.

    out_ref block (3, 8, W): row-block 0 = photometric L1, 1 = x-smoothness,
    2 = y-smoothness.  The block index depends only on the batch axis, so it
    stays VMEM-resident across the (arbitrary) H-tile axis.
    """
    h = pl.program_id(1)

    tgt = tgt_ref[...].astype(jnp.float32)        # (C, TH, W)
    warped = warped_ref[...].astype(jnp.float32)  # (C, TH, W)
    disp = disp_ref[...].astype(jnp.float32)      # (TH, W)

    c_dim, th, w = tgt.shape
    inv_c = 1.0 / c_dim

    col = jax.lax.broadcasted_iota(jnp.int32, (th, w), 1)
    row = jax.lax.broadcasted_iota(jnp.int32, (th, w), 0)

    # ---- photometric L1 term (summed; normalized in the wrapper) ----
    photo_t = jnp.sum(jnp.abs(tgt - warped), axis=0)              # (TH, W)

    # ---- edge-aware smoothness via XLU rolls (backward differences) ----
    # roll(x, +1)[i] = x[i-1]  =>  d[i] = x[i] - x[i-1], valid for i >= 1.
    gx_d = jnp.abs(disp - pltpu.roll(disp, shift=1, axis=1))      # (TH, W)
    gy_d = jnp.abs(disp - pltpu.roll(disp, shift=1, axis=0))      # (TH, W)

    gx_i = jnp.zeros((th, w), jnp.float32)
    gy_i = jnp.zeros((th, w), jnp.float32)
    for c in range(c_dim):                                        # static unroll
        tc = tgt[c]                                               # (TH, W)
        gx_i = gx_i + jnp.abs(tc - pltpu.roll(tc, shift=1, axis=1))
        gy_i = gy_i + jnp.abs(tc - pltpu.roll(tc, shift=1, axis=0))
    gx_i = gx_i * inv_c
    gy_i = gy_i * inv_c

    # jnp.where (not mask-multiply) so wrap-column/row garbage cannot leak NaNs.
    sx_t = jnp.where(col >= 1, gx_d * jnp.exp(-gx_i), 0.0)
    sy_t = jnp.where(row >= 1, gy_d * jnp.exp(-gy_i), 0.0)

    # ---- accumulate into the resident output block ----
    @pl.when(h == 0)
    def _():
        out_ref[...] = jnp.zeros_like(out_ref)

    out_ref[0] += _fold_rows(photo_t)
    out_ref[1] += _fold_rows(sx_t)
    out_ref[2] += _fold_rows(sy_t)

    # ---- y-gradient across the H-tile boundary (halo carried in scratch) ----
    @pl.when(h > 0)
    def _():
        gb_i = jnp.sum(jnp.abs(tgt[:, 0:1, :] - tprev_ref[...]), axis=0) * inv_c  # (1, W)
        gb_d = jnp.abs(disp[0:1, :] - dprev_ref[...])                             # (1, W)
        gb = gb_d * jnp.exp(-gb_i)                                                # (1, W)
        row0 = (jax.lax.broadcasted_iota(jnp.int32, (8, w), 0) == 0)
        out_ref[2] += jnp.where(row0, jnp.broadcast_to(gb, (8, w)), 0.0)

    # save this tile's last row for the next tile's boundary term
    dprev_ref[...] = disp[th - 1:th, :]                           # (1, W)
    tprev_ref[...] = tgt[:, th - 1:th, :]                         # (C, 1, W)


def _choose_tile_h(H, C, W, itemsize, budget_bytes=2 * 1024 * 1024):
    """Largest multiple-of-8 divisor of H whose buffer set fits the budget."""
    bytes_per_row = (2 * C + 1) * W * itemsize
    max_rows = max(8, budget_bytes // max(1, bytes_per_row))
    if H <= max_rows:
        return H
    best = None
    th = 8
    while th <= max_rows:
        if H % th == 0:
            best = th
        th += 8
    return best if best is not None else H


def photometric_loss(target, warped, disp, *, use_smoothness_loss=True,
                     smooth_weight=LAMBDA_SMOOTH, tile_h=None):
    """target/warped: (N, C, H, W); disp: (N, 1, H, W). Returns scalar loss."""
    N, C, H, W = target.shape
    assert warped.shape == (N, C, H, W)
    assert disp.shape == (N, 1, H, W)

    itemsize = jnp.dtype(target.dtype).itemsize
    TH = tile_h if tile_h is not None else _choose_tile_h(H, C, W, itemsize)
    assert H % TH == 0 and (TH % 8 == 0 or TH == H), (H, TH)
    num_th = H // TH

    # explicit scoped-VMEM limit derived from the chosen tile (v7x-safe)
    block_in_bytes = (2 * C + 1) * TH * W * itemsize
    out_block_bytes = 3 * 8 * W * 4
    vmem_limit = int(min(96 * 1024 * 1024,
                         4 * block_in_bytes + 4 * out_block_bytes
                         + 16 * 1024 * 1024))

    kernel = pl.pallas_call(
        _photometric_loss_kernel,
        out_shape=jax.ShapeDtypeStruct((N, 3, 8, W), jnp.float32),
        grid_spec=pltpu.PrefetchScalarGridSpec(
            num_scalar_prefetch=0,
            grid=(N, num_th),
            in_specs=[
                pl.BlockSpec((None, C, TH, W), lambda b, h: (b, 0, h, 0)),
                pl.BlockSpec((None, C, TH, W), lambda b, h: (b, 0, h, 0)),
                pl.BlockSpec((None, None, TH, W), lambda b, h: (b, 0, h, 0)),
            ],
            out_specs=pl.BlockSpec((None, 3, 8, W), lambda b, h: (b, 0, 0, 0)),
            scratch_shapes=[
                pltpu.VMEM((1, W), jnp.float32),     # prev tile's last disp row
                pltpu.VMEM((C, 1, W), jnp.float32),  # prev tile's last image row
            ],
        ),
        compiler_params=pltpu.CompilerParams(
            dimension_semantics=("parallel", "arbitrary"),
            vmem_limit_bytes=vmem_limit,
        ),
    )

    parts = kernel(target, warped, disp)             # (N, 3, 8, W) f32
    sums = jnp.sum(parts, axis=(0, 2, 3))            # (3,)

    loss = sums[0] / float(N * C * H * W)
    if use_smoothness_loss:
        smooth = (sums[1] / float(N * H * (W - 1))
                  + sums[2] / float(N * (H - 1) * W))
        loss = loss + smooth_weight * smooth
    return loss


class PhotometricLoss:
    """Mirror of the (stub) PyTorch module interface."""

    def __init__(self, model=None, use_smoothness_loss=True):
        del model  # unused, as in the reference __init__
        self.use_smoothness_loss = use_smoothness_loss

    def forward(self, sample, model_output):
        return photometric_loss(
            sample["target"],
            model_output["warped"],
            model_output["disp"],
            use_smoothness_loss=self.use_smoothness_loss,
        )

    __call__ = forward


def _reference_loss(target, warped, disp, use_smoothness_loss=True,
                    smooth_weight=LAMBDA_SMOOTH):
    """Pure-JAX reference for correctness check."""
    photo = jnp.mean(jnp.abs(target - warped))
    loss = photo
    if use_smoothness_loss:
        d = disp[:, 0]
        gx_d = jnp.abs(d[:, :, 1:] - d[:, :, :-1])
        gy_d = jnp.abs(d[:, 1:, :] - d[:, :-1, :])
        gx_i = jnp.mean(jnp.abs(target[:, :, :, 1:] - target[:, :, :, :-1]), axis=1)
        gy_i = jnp.mean(jnp.abs(target[:, :, 1:, :] - target[:, :, :-1, :]), axis=1)
        smooth = (jnp.mean(gx_d * jnp.exp(-gx_i))
                  + jnp.mean(gy_d * jnp.exp(-gy_i)))
        loss = loss + smooth_weight * smooth
    return loss


if __name__ == "__main__":
    key = jax.random.PRNGKey(0)
    k1, k2, k3 = jax.random.split(key, 3)

    N, C, H, W = 2, 4, 16, 16
    target = jax.random.uniform(k1, (N, C, H, W), dtype=jnp.float32)
    warped = target + 0.05 * jax.random.normal(k2, (N, C, H, W), dtype=jnp.float32)
    disp = jax.random.uniform(k3, (N, 1, H, W), dtype=jnp.float32)

    module = PhotometricLoss(model=None, use_smoothness_loss=True)
    loss = module({"target": target}, {"warped": warped, "disp": disp})
    loss = jax.block_until_ready(loss)

    ref = _reference_loss(target, warped, disp)
    assert jnp.allclose(loss, ref, rtol=1e-5, atol=1e-6), (loss, ref)

    # Exercise the H-tiled path explicitly (2 tiles -> boundary halo carry).
    loss_tiled = photometric_loss(target, warped, disp, tile_h=8)
    loss_tiled = jax.block_until_ready(loss_tiled)
    assert jnp.allclose(loss_tiled, ref, rtol=1e-5, atol=1e-6), (loss_tiled, ref)

    print("KERNEL_OK")
</pallas_src>

<mosaic_0001>
module attributes {stable_mosaic.version = 11 : i64} {
  func.func @_photometric_loss_kernel(%arg0: i32, %arg1: i32, %arg2: memref<1x4x16x16xf32, #tpu.memory_space<vmem>>, %arg3: memref<1x4x16x16xf32, #tpu.memory_space<vmem>>, %arg4: memref<1x1x16x16xf32, #tpu.memory_space<vmem>>, %arg5: memref<1x3x8x16xf32, #tpu.memory_space<vmem>>, %arg6: memref<1x16xf32, #tpu.memory_space<vmem>>, %arg7: memref<4x1x16xf32, #tpu.memory_space<vmem>>) attributes {dimension_semantics = [#tpu.dimension_semantics<parallel>, #tpu.dimension_semantics<arbitrary>], iteration_bounds = array<i64: 2, 1>, scalar_prefetch = 0 : i64, scratch_operands = 2 : i64, tpu.core_type = #tpu.core_type<tc>, window_params = [{transform_indices = @transform_0, window_bounds = array<i64: 1, 4, 16, 16>}, {transform_indices = @transform_1, window_bounds = array<i64: 1, 4, 16, 16>}, {transform_indices = @transform_2, window_bounds = array<i64: 1, 1, 16, 16>}, {transform_indices = @transform_3, window_bounds = array<i64: 1, 3, 8, 16>}]} {
    %c0 = arith.constant 0 : index
    %c0_0 = arith.constant 0 : index
    %c0_1 = arith.constant 0 : index
    %c0_2 = arith.constant 0 : index
    %0 = vector.load %arg2[%c0, %c0_0, %c0_1, %c0_2] : memref<1x4x16x16xf32, #tpu.memory_space<vmem>>, vector<1x4x16x16xf32>
    %1 = vector.shape_cast %0 : vector<1x4x16x16xf32> to vector<4x16x16xf32>
    %c0_3 = arith.constant 0 : index
    %c0_4 = arith.constant 0 : index
    %c0_5 = arith.constant 0 : index
    %c0_6 = arith.constant 0 : index
    %2 = vector.load %arg3[%c0_3, %c0_4, %c0_5, %c0_6] : memref<1x4x16x16xf32, #tpu.memory_space<vmem>>, vector<1x4x16x16xf32>
    %3 = vector.shape_cast %2 : vector<1x4x16x16xf32> to vector<4x16x16xf32>
    %c0_7 = arith.constant 0 : index
    %c0_8 = arith.constant 0 : index
    %c0_9 = arith.constant 0 : index
    %c0_10 = arith.constant 0 : index
    %4 = vector.load %arg4[%c0_7, %c0_8, %c0_9, %c0_10] : memref<1x1x16x16xf32, #tpu.memory_space<vmem>>, vector<1x1x16x16xf32>
    %5 = vector.shape_cast %4 : vector<1x1x16x16xf32> to vector<16x16xf32>
    %6 = tpu.iota {dimensions = array<i32: 1>} : vector<16x16xi32>
    %7 = tpu.iota {dimensions = array<i32: 0>} : vector<16x16xi32>
    %8 = arith.subf %1, %3 : vector<4x16x16xf32>
    %9 = math.absf %8 : vector<4x16x16xf32>
    %cst = arith.constant dense<0.000000e+00> : vector<16x16xf32>
    %10 = vector.multi_reduction <add>, %9, %cst [0] : vector<4x16x16xf32> to vector<16x16xf32>
    %c1_i32 = arith.constant 1 : i32
    %11 = tpu.dynamic_rotate %5 by %c1_i32 dim 1 : vector<16x16xf32>, i32 -> vector<16x16xf32>
    %12 = arith.subf %5, %11 : vector<16x16xf32>
    %13 = math.absf %12 : vector<16x16xf32>
    %c1_i32_11 = arith.constant 1 : i32
    %14 = tpu.dynamic_rotate %5 by %c1_i32_11 dim 0 : vector<16x16xf32>, i32 -> vector<16x16xf32>
    %15 = arith.subf %5, %14 : vector<16x16xf32>
    %16 = math.absf %15 : vector<16x16xf32>
    %cst_12 = arith.constant 0.000000e+00 : f32
    %17 = vector.broadcast %cst_12 : f32 to vector<16x16xf32>
    %cst_13 = arith.constant 0.000000e+00 : f32
    %18 = vector.broadcast %cst_13 : f32 to vector<16x16xf32>
    %19 = vector.extract_strided_slice %1 {offsets = [0, 0, 0], sizes = [1, 16, 16], strides = [1, 1, 1]} : vector<4x16x16xf32> to vector<1x16x16xf32>
    %20 = vector.shape_cast %19 : vector<1x16x16xf32> to vector<16x16xf32>
    %c1_i32_14 = arith.constant 1 : i32
    %21 = tpu.dynamic_rotate %20 by %c1_i32_14 dim 1 : vector<16x16xf32>, i32 -> vector<16x16xf32>
    %22 = arith.subf %20, %21 : vector<16x16xf32>
    %23 = math.absf %22 : vector<16x16xf32>
    %24 = arith.addf %17, %23 : vector<16x16xf32>
    %c1_i32_15 = arith.constant 1 : i32
    %25 = tpu.dynamic_rotate %20 by %c1_i32_15 dim 0 : vector<16x16xf32>, i32 -> vector<16x16xf32>
    %26 = arith.subf %20, %25 : vector<16x16xf32>
    %27 = math.absf %26 : vector<16x16xf32>
    %28 = arith.addf %18, %27 : vector<16x16xf32>
    %29 = vector.extract_strided_slice %1 {offsets = [1, 0, 0], sizes = [1, 16, 16], strides = [1, 1, 1]} : vector<4x16x16xf32> to vector<1x16x16xf32>
    %30 = vector.shape_cast %29 : vector<1x16x16xf32> to vector<16x16xf32>
    %c1_i32_16 = arith.constant 1 : i32
    %31 = tpu.dynamic_rotate %30 by %c1_i32_16 dim 1 : vector<16x16xf32>, i32 -> vector<16x16xf32>
    %32 = arith.subf %30, %31 : vector<16x16xf32>
    %33 = math.absf %32 : vector<16x16xf32>
    %34 = arith.addf %24, %33 : vector<16x16xf32>
    %c1_i32_17 = arith.constant 1 : i32
    %35 = tpu.dynamic_rotate %30 by %c1_i32_17 dim 0 : vector<16x16xf32>, i32 -> vector<16x16xf32>
    %36 = arith.subf %30, %35 : vector<16x16xf32>
    %37 = math.absf %36 : vector<16x16xf32>
    %38 = arith.addf %28, %37 : vector<16x16xf32>
    %39 = vector.extract_strided_slice %1 {offsets = [2, 0, 0], sizes = [1, 16, 16], strides = [1, 1, 1]} : vector<4x16x16xf32> to vector<1x16x16xf32>
    %40 = vector.shape_cast %39 : vector<1x16x16xf32> to vector<16x16xf32>
    %c1_i32_18 = arith.constant 1 : i32
    %41 = tpu.dynamic_rotate %40 by %c1_i32_18 dim 1 : vector<16x16xf32>, i32 -> vector<16x16xf32>
    %42 = arith.subf %40, %41 : vector<16x16xf32>
    %43 = math.absf %42 : vector<16x16xf32>
    %44 = arith.addf %34, %43 : vector<16x16xf32>
    %c1_i32_19 = arith.constant 1 : i32
    %45 = tpu.dynamic_rotate %40 by %c1_i32_19 dim 0 : vector<16x16xf32>, i32 -> vector<16x16xf32>
    %46 = arith.subf %40, %45 : vector<16x16xf32>
    %47 = math.absf %46 : vector<16x16xf32>
    %48 = arith.addf %38, %47 : vector<16x16xf32>
    %49 = vector.extract_strided_slice %1 {offsets = [3, 0, 0], sizes = [1, 16, 16], strides = [1, 1, 1]} : vector<4x16x16xf32> to vector<1x16x16xf32>
    %50 = vector.shape_cast %49 : vector<1x16x16xf32> to vector<16x16xf32>
    %c1_i32_20 = arith.constant 1 : i32
    %51 = tpu.dynamic_rotate %50 by %c1_i32_20 dim 1 : vector<16x16xf32>, i32 -> vector<16x16xf32>
    %52 = arith.subf %50, %51 : vector<16x16xf32>
    %53 = math.absf %52 : vector<16x16xf32>
    %54 = arith.addf %44, %53 : vector<16x16xf32>
    %c1_i32_21 = arith.constant 1 : i32
    %55 = tpu.dynamic_rotate %50 by %c1_i32_21 dim 0 : vector<16x16xf32>, i32 -> vector<16x16xf32>
    %56 = arith.subf %50, %55 : vector<16x16xf32>
    %57 = math.absf %56 : vector<16x16xf32>
    %58 = arith.addf %48, %57 : vector<16x16xf32>
    %cst_22 = arith.constant 2.500000e-01 : f32
    %59 = vector.broadcast %cst_22 : f32 to vector<16x16xf32>
    %60 = arith.mulf %54, %59 : vector<16x16xf32>
    %cst_23 = arith.constant 2.500000e-01 : f32
    %61 = vector.broadcast %cst_23 : f32 to vector<16x16xf32>
    %62 = arith.mulf %58, %61 : vector<16x16xf32>
    %c1_i32_24 = arith.constant 1 : i32
    %63 = vector.broadcast %c1_i32_24 : i32 to vector<16x16xi32>
    %64 = arith.cmpi sge, %6, %63 : vector<16x16xi32>
    %cst_25 = arith.constant 0.000000e+00 : f32
    %65 = vector.broadcast %cst_25 : f32 to vector<16x16xf32>
    %66 = arith.subf %65, %60 : vector<16x16xf32>
    %67 = math.exp %66 : vector<16x16xf32>
    %68 = arith.mulf %13, %67 : vector<16x16xf32>
    %cst_26 = arith.constant 0.000000e+00 : f32
    %69 = vector.broadcast %cst_26 : f32 to vector<16x16xf32>
    %70 = arith.select %64, %68, %69 : vector<16x16xi1>, vector<16x16xf32>
    %c1_i32_27 = arith.constant 1 : i32
    %71 = vector.broadcast %c1_i32_27 : i32 to vector<16x16xi32>
    %72 = arith.cmpi sge, %7, %71 : vector<16x16xi32>
    %cst_28 = arith.constant 0.000000e+00 : f32
    %73 = vector.broadcast %cst_28 : f32 to vector<16x16xf32>
    %74 = arith.subf %73, %62 : vector<16x16xf32>
    %75 = math.exp %74 : vector<16x16xf32>
    %76 = arith.mulf %16, %75 : vector<16x16xf32>
    %cst_29 = arith.constant 0.000000e+00 : f32
    %77 = vector.broadcast %cst_29 : f32 to vector<16x16xf32>
    %78 = arith.select %72, %76, %77 : vector<16x16xi1>, vector<16x16xf32>
    %c0_i32 = arith.constant 0 : i32
    %79 = arith.cmpi eq, %arg1, %c0_i32 : i32
    %80 = arith.extui %79 : i1 to i32
    %c0_i32_30 = arith.constant 0 : i32
    %81 = arith.cmpi ne, %80, %c0_i32_30 : i32
    scf.if %81 {
      %cst_63 = arith.constant 0.000000e+00 : f32
      %113 = vector.broadcast %cst_63 : f32 to vector<3x8x16xf32>
      %c0_64 = arith.constant 0 : index
      %c0_65 = arith.constant 0 : index
      %c0_66 = arith.constant 0 : index
      %c0_67 = arith.constant 0 : index
      %114 = vector.load %arg5[%c0_64, %c0_65, %c0_66, %c0_67] : memref<1x3x8x16xf32, #tpu.memory_space<vmem>>, vector<1x3x8x16xf32>
      %115 = vector.shape_cast %114 : vector<1x3x8x16xf32> to vector<3x8x16xf32>
      %116 = vector.shape_cast %113 : vector<3x8x16xf32> to vector<1x3x8x16xf32>
      tpu.vector_store %arg5[%c0_64, %c0_65, %c0_66, %c0_67], %116 {strides = array<i32>} : memref<1x3x8x16xf32, #tpu.memory_space<vmem>>, vector<1x3x8x16xf32>,
    } else {
    }
    %c0_31 = arith.constant 0 : index
    %c0_32 = arith.constant 0 : index
    %c0_33 = arith.constant 0 : index
    %c0_34 = arith.constant 0 : index
    %82 = vector.load %arg5[%c0_31, %c0_32, %c0_33, %c0_34] : memref<1x3x8x16xf32, #tpu.memory_space<vmem>>, vector<1x1x8x16xf32>
    %83 = vector.shape_cast %82 : vector<1x1x8x16xf32> to vector<8x16xf32>
    %84 = vector.shape_cast %10 : vector<16x16xf32> to vector<2x8x16xf32>
    %cst_35 = arith.constant dense<0.000000e+00> : vector<8x16xf32>
    %85 = vector.multi_reduction <add>, %84, %cst_35 [0] : vector<2x8x16xf32> to vector<8x16xf32>
    %86 = arith.addf %83, %85 : vector<8x16xf32>
    %c0_36 = arith.constant 0 : index
    %c0_37 = arith.constant 0 : index
    %c0_38 = arith.constant 0 : index
    %c0_39 = arith.constant 0 : index
    %87 = vector.load %arg5[%c0_36, %c0_37, %c0_38, %c0_39] : memref<1x3x8x16xf32, #tpu.memory_space<vmem>>, vector<1x1x8x16xf32>
    %88 = vector.shape_cast %87 : vector<1x1x8x16xf32> to vector<8x16xf32>
    %89 = vector.shape_cast %86 : vector<8x16xf32> to vector<1x1x8x16xf32>
    tpu.vector_store %arg5[%c0_36, %c0_37, %c0_38, %c0_39], %89 {strides = array<i32>} : memref<1x3x8x16xf32, #tpu.memory_space<vmem>>, vector<1x1x8x16xf32>,
    %c0_40 = arith.constant 0 : index
    %c1 = arith.constant 1 : index
    %c0_41 = arith.constant 0 : index
    %c0_42 = arith.constant 0 : index
    %90 = vector.load %arg5[%c0_40, %c1, %c0_41, %c0_42] : memref<1x3x8x16xf32, #tpu.memory_space<vmem>>, vector<1x1x8x16xf32>
    %91 = vector.shape_cast %90 : vector<1x1x8x16xf32> to vector<8x16xf32>
    %92 = vector.shape_cast %70 : vector<16x16xf32> to vector<2x8x16xf32>
    %cst_43 = arith.constant dense<0.000000e+00> : vector<8x16xf32>
    %93 = vector.multi_reduction <add>, %92, %cst_43 [0] : vector<2x8x16xf32> to vector<8x16xf32>
    %94 = arith.addf %91, %93 : vector<8x16xf32>
    %c0_44 = arith.constant 0 : index
    %c1_45 = arith.constant 1 : index
    %c0_46 = arith.constant 0 : index
    %c0_47 = arith.constant 0 : index
    %95 = vector.load %arg5[%c0_44, %c1_45, %c0_46, %c0_47] : memref<1x3x8x16xf32, #tpu.memory_space<vmem>>, vector<1x1x8x16xf32>
    %96 = vector.shape_cast %95 : vector<1x1x8x16xf32> to vector<8x16xf32>
    %97 = vector.shape_cast %94 : vector<8x16xf32> to vector<1x1x8x16xf32>
    tpu.vector_store %arg5[%c0_44, %c1_45, %c0_46, %c0_47], %97 {strides = array<i32>} : memref<1x3x8x16xf32, #tpu.memory_space<vmem>>, vector<1x1x8x16xf32>,
    %c0_48 = arith.constant 0 : index
    %c2 = arith.constant 2 : index
    %c0_49 = arith.constant 0 : index
    %c0_50 = arith.constant 0 : index
    %98 = vector.load %arg5[%c0_48, %c2, %c0_49, %c0_50] : memref<1x3x8x16xf32, #tpu.memory_space<vmem>>, vector<1x1x8x16xf32>
    %99 = vector.shape_cast %98 : vector<1x1x8x16xf32> to vector<8x16xf32>
    %100 = vector.shape_cast %78 : vector<16x16xf32> to vector<2x8x16xf32>
    %cst_51 = arith.constant dense<0.000000e+00> : vector<8x16xf32>
    %101 = vector.multi_reduction <add>, %100, %cst_51 [0] : vector<2x8x16xf32> to vector<8x16xf32>
    %102 = arith.addf %99, %101 : vector<8x16xf32>
    %c0_52 = arith.constant 0 : index
    %c2_53 = arith.constant 2 : index
    %c0_54 = arith.constant 0 : index
    %c0_55 = arith.constant 0 : index
    %103 = vector.load %arg5[%c0_52, %c2_53, %c0_54, %c0_55] : memref<1x3x8x16xf32, #tpu.memory_space<vmem>>, vector<1x1x8x16xf32>
    %104 = vector.shape_cast %103 : vector<1x1x8x16xf32> to vector<8x16xf32>
    %105 = vector.shape_cast %102 : vector<8x16xf32> to vector<1x1x8x16xf32>
    tpu.vector_store %arg5[%c0_52, %c2_53, %c0_54, %c0_55], %105 {strides = array<i32>} : memref<1x3x8x16xf32, #tpu.memory_space<vmem>>, vector<1x1x8x16xf32>,
    %c0_i32_56 = arith.constant 0 : i32
    %106 = arith.cmpi sgt, %arg1, %c0_i32_56 : i32
    %107 = arith.extui %106 : i1 to i32
    %c0_i32_57 = arith.constant 0 : i32
    %108 = arith.cmpi ne, %107, %c0_i32_57 : i32
    scf.if %108 {
      %113 = vector.extract_strided_slice %1 {offsets = [0, 0, 0], sizes = [4, 1, 16], strides = [1, 1, 1]} : vector<4x16x16xf32> to vector<4x1x16xf32>
      %c0_63 = arith.constant 0 : index
      %c0_64 = arith.constant 0 : index
      %c0_65 = arith.constant 0 : index
      %114 = vector.load %arg7[%c0_63, %c0_64, %c0_65] : memref<4x1x16xf32, #tpu.memory_space<vmem>>, vector<4x1x16xf32>
      %115 = arith.subf %113, %114 : vector<4x1x16xf32>
      %116 = math.absf %115 : vector<4x1x16xf32>
      %cst_66 = arith.constant dense<0.000000e+00> : vector<1x16xf32>
      %117 = vector.multi_reduction <add>, %116, %cst_66 [0] : vector<4x1x16xf32> to vector<1x16xf32>
      %cst_67 = arith.constant 2.500000e-01 : f32
      %118 = vector.broadcast %cst_67 : f32 to vector<1x16xf32>
      %119 = arith.mulf %117, %118 : vector<1x16xf32>
      %120 = vector.extract_strided_slice %5 {offsets = [0, 0], sizes = [1, 16], strides = [1, 1]} : vector<16x16xf32> to vector<1x16xf32>
      %c0_68 = arith.constant 0 : index
      %c0_69 = arith.constant 0 : index
      %121 = vector.load %arg6[%c0_68, %c0_69] : memref<1x16xf32, #tpu.memory_space<vmem>>, vector<1x16xf32>
      %122 = arith.subf %120, %121 : vector<1x16xf32>
      %123 = math.absf %122 : vector<1x16xf32>
      %cst_70 = arith.constant 0.000000e+00 : f32
      %124 = vector.broadcast %cst_70 : f32 to vector<1x16xf32>
      %125 = arith.subf %124, %119 : vector<1x16xf32>
      %126 = math.exp %125 : vector<1x16xf32>
      %127 = arith.mulf %123, %126 : vector<1x16xf32>
      %128 = tpu.iota {dimensions = array<i32: 0>} : vector<8x16xi32>
      %c0_i32_71 = arith.constant 0 : i32
      %129 = vector.broadcast %c0_i32_71 : i32 to vector<8x16xi32>
      %130 = arith.cmpi eq, %128, %129 : vector<8x16xi32>
      %c0_72 = arith.constant 0 : index
      %c2_73 = arith.constant 2 : index
      %c0_74 = arith.constant 0 : index
      %c0_75 = arith.constant 0 : index
      %131 = vector.load %arg5[%c0_72, %c2_73, %c0_74, %c0_75] : memref<1x3x8x16xf32, #tpu.memory_space<vmem>>, vector<1x1x8x16xf32>
      %132 = vector.shape_cast %131 : vector<1x1x8x16xf32> to vector<8x16xf32>
      %133 = vector.shape_cast %127 : vector<1x16xf32> to vector<1x16xf32>
      %134 = vector.broadcast %133 : vector<1x16xf32> to vector<8x16xf32>
      %cst_76 = arith.constant 0.000000e+00 : f32
      %135 = vector.broadcast %cst_76 : f32 to vector<8x16xf32>
      %136 = arith.select %130, %134, %135 : vector<8x16xi1>, vector<8x16xf32>
      %137 = arith.addf %132, %136 : vector<8x16xf32>
      %c0_77 = arith.constant 0 : index
      %c2_78 = arith.constant 2 : index
      %c0_79 = arith.constant 0 : index
      %c0_80 = arith.constant 0 : index
      %138 = vector.load %arg5[%c0_77, %c2_78, %c0_79, %c0_80] : memref<1x3x8x16xf32, #tpu.memory_space<vmem>>, vector<1x1x8x16xf32>
      %139 = vector.shape_cast %138 : vector<1x1x8x16xf32> to vector<8x16xf32>
      %140 = vector.shape_cast %137 : vector<8x16xf32> to vector<1x1x8x16xf32>
      tpu.vector_store %arg5[%c0_77, %c2_78, %c0_79, %c0_80], %140 {strides = array<i32>} : memref<1x3x8x16xf32, #tpu.memory_space<vmem>>, vector<1x1x8x16xf32>,
    } else {
    }
    %109 = vector.extract_strided_slice %5 {offsets = [15, 0], sizes = [1, 16], strides = [1, 1]} : vector<16x16xf32> to vector<1x16xf32>
    %c0_58 = arith.constant 0 : index
    %c0_59 = arith.constant 0 : index
    %110 = vector.load %arg6[%c0_58, %c0_59] : memref<1x16xf32, #tpu.memory_space<vmem>>, vector<1x16xf32>
    tpu.vector_store %arg6[%c0_58, %c0_59], %109 {strides = array<i32>} : memref<1x16xf32, #tpu.memory_space<vmem>>, vector<1x16xf32>,
    %111 = vector.extract_strided_slice %1 {offsets = [0, 15, 0], sizes = [4, 1, 16], strides = [1, 1, 1]} : vector<4x16x16xf32> to vector<4x1x16xf32>
    %c0_60 = arith.constant 0 : index
    %c0_61 = arith.constant 0 : index
    %c0_62 = arith.constant 0 : index
    %112 = vector.load %arg7[%c0_60, %c0_61, %c0_62] : memref<4x1x16xf32, #tpu.memory_space<vmem>>, vector<4x1x16xf32>
    tpu.vector_store %arg7[%c0_60, %c0_61, %c0_62], %111 {strides = array<i32>} : memref<4x1x16xf32, #tpu.memory_space<vmem>>, vector<4x1x16xf32>,
    return
  }
  func.func @transform_0(%arg0: i32, %arg1: i32) -> (i32, i32, i32, i32) {
    %c0_i32 = arith.constant 0 : i32
    %c0_i32_0 = arith.constant 0 : i32
    %c0_i32_1 = arith.constant 0 : i32
    return %arg0, %c0_i32, %arg1, %c0_i32_0 : i32, i32, i32, i32
  }
  func.func @transform_1(%arg0: i32, %arg1: i32) -> (i32, i32, i32, i32) {
    %c0_i32 = arith.constant 0 : i32
    %c0_i32_0 = arith.constant 0 : i32
    %c0_i32_1 = arith.constant 0 : i32
    return %arg0, %c0_i32, %arg1, %c0_i32_0 : i32, i32, i32, i32
  }
  func.func @transform_2(%arg0: i32, %arg1: i32) -> (i32, i32, i32, i32) {
    %c0_i32 = arith.constant 0 : i32
    %c0_i32_0 = arith.constant 0 : i32
    %c0_i32_1 = arith.constant 0 : i32
    return %arg0, %c0_i32, %arg1, %c0_i32_0 : i32, i32, i32, i32
  }
  func.func @transform_3(%arg0: i32, %arg1: i32) -> (i32, i32, i32, i32) {
    %c0_i32 = arith.constant 0 : i32
    %c0_i32_0 = arith.constant 0 : i32
    %c0_i32_1 = arith.constant 0 : i32
    %c0_i32_2 = arith.constant 0 : i32
    return %arg0, %c0_i32, %c0_i32_0, %c0_i32_1 : i32, i32, i32, i32
  }
}

</mosaic_0001>

<bundles_post_ra>
// kernel: tpu_custom_call.1
= control target key start
LH: loop header
LB: loop body
LE: loop exit
PB: predicated region body
PF: predicated region fallthrough
CT: control target
= control target key end

     0   :  { %s1510_s0 = inlined_call_operand.hbm [shape: f32[2,4,16,16], index: 0, kind: input, shape index: {}]   ;;  %s1511_s1 = inlined_call_operand.hbm [shape: f32[2,4,16,16], index: 1, kind: input, shape index: {}]   ;;  %s1512_s2 = inlined_call_operand.hbm [shape: f32[2,1,16,16], index: 2, kind: input, shape index: {}]   ;;  %s1513_s3 = inlined_call_operand.hbm [shape: f32[2,3,8,16], index: 3, kind: output, shape index: {}]  }
   0x1   :  { %1517 = sst [smem:[#allocation16_spill]] %s1510_s0 }
   0x2   :  { %1518 = sst [smem:[#allocation17_spill]] %s1511_s1 }
   0x3   :  { %8 = vsyncpa [#allocation5], 0 }
   0x4   :  { %10 = vsyncpa [#allocation5 + $0x1], 0 }
   0x5   :  { %11 = vsyncpa [#allocation8], 0 }
   0x6   :  { %13 = vsyncpa [#allocation8 + $0x1], 0 }
   0x7   :  { %14 = vsyncpa [#allocation6], 0 }
   0x8   :  { %16 = vsyncpa [#allocation6 + $0x1], 0  ;;  %s1092_s12 = smov 0   ;;  %s1094_s13 = smov 0  }
   0x9   :  { %s1096_s14 = smov 0   ;;  %s1098_s15 = smov 0  }
   0xa   :  { %s1100_s16 = smov 0   ;;  %s1102_s17 = smov 0  }
   0xb LB: > { %s1123_s18 = sadd.s32 4294967295, %s1059_s17   ;;  %s774_s19 = sadd.s32 4294967294, %s1059_s17   ;;  %s1059_s17 = sphi %s1102_s17, %s22_s17   ;;  %s1055_s16 = sphi %s1100_s16, %s1537_s16   ;;  %s1051_s15 = sphi %s1098_s15, %s1536_s15   ;;  %s1047_s14 = sphi %s1096_s14, %s1535_s14   ;;  %s1043_s13 = sphi %s1094_s13, %s1534_s13   ;;  %s1039_s12 = sphi %s1092_s12, %s1533_s12  }
   0xc   : > { %s34_s20 = sadd.s32 1, %s1055_s16  ;;  %s43_s21 = sadd.s32 1, %s1047_s14 }
   0xd   : > { %p36_p0 = scmp.ge.s32.totalorder %s34_s20, 2  ;;  %p50_p1 = scmp.ne.s32.totalorder %s1047_s14, %s1043_s13 }
   0xe   : > { %p51_p2 = scmp.eq.s32.totalorder %s1059_s17, 0  ;;  %p56_p3 = scmp.ne.s32.totalorder %s1043_s13, %s1039_s12 }
   0xf   : > { %s1539_s20 = smov (%p36_p0, %s34_s20), 0  ;;  %p57_p5 = scmp.eq.s32.totalorder %s1123_s18, 0 }
  0x10   : > { %1519 = sst [smem:[#allocation14_spill]] %s1539_s20  ;;  %p1135_p4 = por %p51_p2, %p50_p1 }
  0x11   : > { %s38_s23 = ssub.s32 %s1055_s16, %s1539_s20  ;;  %p136_p6 = scmp.eq.s32.totalorder %s1123_s18, 1 }
  0x12   : > { %p41_p7 = scmp.eq.s32.totalorder %s38_s23, 0  ;;  %p1143_p8 = por %p57_p5, %p56_p3 }
  0x13   : > { %p1147_p9 = por %p136_p6, %p50_p1  ;;  %p142_p10 = scmp.eq.s32.totalorder %s774_s19, 1 }
  0x14   : > { %s1152_s26 = scalar_select %p41_p7, %s1047_s14, %s43_s21  }
  0x15   : > { %p1154_p11 = por %p142_p10, %p56_p3  ;;  %p826_p13 = scmp.lt.s32.totalorder %s1059_s17, 2 }
  0x16   : > { %1523 = sst [smem:[#allocation15_spill]] %s1152_s26  ;;  %s1161_s28 = sand.u32 1, %s1047_s14  }
  0x17   : > { %s777_s29 = sshll.u32 %s1161_s28, 6  ;;  %s799_s30 = sshll.u32 %s1055_s16, 10 }
  0x18   : > { %p1167_p0 = pnand %p826_p13, %p1135_p4  ;;  %s185_s5 = sand.u32 1, %s1059_s17  }
  0x19   : > { %s1526_s1 = sld [smem:[#allocation17_spill]]  ;;  %s189_s9 = scalar_lea.vmem [#allocation7], %s777_s29 }
  0x1a   : > { %s198_s10 = sshll.u32 %s189_s9, 4  ;;  %p786_p1 = scmp.ge.s32.totalorder %s1059_s17, 1  ;;  %s199_s10 = int_to_ptr.vmem [resolvable:$true] %s198_s10 }
  0x1b   : > { %p229_p2 = scmp.lt.s32.totalorder %s1059_s17, 3  ;;  %s1181_s11 = scalar_lea.sflag [#allocation8], %s185_s5 }
  0x1c   : > { %p893_p3 = pneg %p1167_p0  ;;  %s904_s19 = scalar_lea.vmem %s199_s10, 1024 }
  0x1d   : > { %p905_p4 = scmp.ne.s32.totalorder %s199_s10, %s904_s19  ;;  %s1061_s21 = smov [#allocation7]  }
  0x1e   : > { %s909_s22 = sshll.u32 %s1061_s21, 4  ;;  %s910_s22 = int_to_ptr.vmem [resolvable:$false] %s909_s22 }
  0x1f   : > { %s197_s8 = scalar_lea.hbm %s1526_s1, %s799_s30  ;;  %p907_p5 = pnand %p905_p4, %p893_p3 }
  0x20   : > { %s911_s23 = scalar_lea.vmem %s910_s22, 2048  ;;  %p912_p7 = scmp.lt.s32.totalorder %s199_s10, %s910_s22 }
  0x21   : > { %p908_p6 = pneg %p907_p5  ;;  %p913_p10 = scmp.lt.s32.totalorder %s911_s23, %s904_s19 }
  0x23   : > { %p914_p13 = por %p913_p10, %p912_p7 }
  0x25   : > { %p915_p12 = pnand %p914_p13, %p908_p6 }
  0x27   : > { %918 = shalt.err (!%p915_p12)
}
  0x28   : > { %s1515_s6 = smov 128   ;;  %s1063_s5 = smov 8  }
  0x29   : > { %818 = dma.hbm_to_vmem [thread:$0]  (!%p1167_p0), %s197_s8, 1024, %s199_s10, %s1181_s11, %s1515_s6, %s1515_s6, %s1063_s5  }
  0x2a   : > { %p1198_p4 = pnand %p786_p1, %p229_p2  ;;  %s1528_s0 = sld [smem:[#allocation16_spill]] }
  0x2b   : > { %s166_s22 = scalar_lea.vmem [#allocation4], %s777_s29  ;;  %s783_s1 = sshll.u32 %s1161_s28, 4 }
  0x2c   : > { %s175_s23 = sshll.u32 %s166_s22, 4  ;;  %s163_s20 = scalar_lea.sflag [#allocation5], %s1161_s28  ;;  %s176_s23 = int_to_ptr.vmem [resolvable:$true] %s175_s23 }
  0x2d   : > { %s932_s26 = scalar_lea.vmem %s176_s23, 1024  ;;  %s1064_s8 = smov [#allocation4]  }
  0x2e   : > { %p933_p12 = scmp.ne.s32.totalorder %s176_s23, %s932_s26  ;;  %s937_s10 = sshll.u32 %s1064_s8, 4  ;;  %s938_s10 = int_to_ptr.vmem [resolvable:$false] %s937_s10 }
  0x2f   : > { %s939_s6 = scalar_lea.vmem %s938_s10, 2048  ;;  %p940_p2 = scmp.lt.s32.totalorder %s176_s23, %s938_s10 }
  0x30   : > { %s174_s21 = scalar_lea.hbm %s1528_s0, %s799_s30  ;;  %p935_p5 = pnand %p933_p12, %p893_p3 }
  0x31   : > { %p941_p6 = scmp.lt.s32.totalorder %s939_s6, %s932_s26 }
  0x32   : > { %p936_p1 = pneg %p935_p5 }
  0x33   : > { %p942_p7 = por %p941_p6, %p940_p2 }
  0x35   : > { %p943_p10 = pnand %p942_p7, %p936_p1 }
  0x37   : > { %946 = shalt.err (!%p943_p10)
}
  0x38   : > { %s1529_s29 = smov 128   ;;  %s801_s28 = sshll.u32 %s1055_s16, 8 }
  0x39   : > { %815 = dma.hbm_to_vmem [thread:$0]  (!%p1167_p0), %s174_s21, 1024, %s176_s23, %s163_s20, %s1529_s29, %s1529_s29, %s1063_s5  }
  0x3a   : > { %s212_s30 = scalar_lea.vmem [#allocation9], %s783_s1  ;;  %s220_s8 = scalar_lea.hbm %s1512_s2, %s801_s28 }
  0x3b   : > { %s221_s9 = sshll.u32 %s212_s30, 4  ;;  %s1065_s6 = smov [#allocation9]   ;;  %s222_s9 = int_to_ptr.vmem [resolvable:$true] %s221_s9 }
  0x3c   : > { %s960_s26 = scalar_lea.vmem %s222_s9, 256  ;;  %s965_s10 = sshll.u32 %s1065_s6, 4  ;;  %s966_s10 = int_to_ptr.vmem [resolvable:$false] %s965_s10 }
  0x3d   : > { %p961_p13 = scmp.ne.s32.totalorder %s222_s9, %s960_s26  ;;  %s967_s0 = scalar_lea.vmem %s966_s10, 512 }
  0x3e   : > { %p968_p1 = scmp.lt.s32.totalorder %s222_s9, %s966_s10  ;;  %p969_p2 = scmp.lt.s32.totalorder %s967_s0, %s960_s26 }
  0x3f   : > { %p963_p12 = pnand %p961_p13, %p893_p3 }
  0x40   : > { %p970_p6 = por %p969_p2, %p968_p1 }
  0x41   : > { %p964_p5 = pneg %p963_p12 }
  0x43   : > { %p971_p7 = pnand %p970_p6, %p964_p5 }
  0x45   : > { %974 = shalt.err (!%p971_p7)
}
  0x46   : > { %821 = dma.hbm_to_vmem [thread:$0]  (!%p1167_p0), %s220_s8, 256, %s222_s9, %s1181_s11, %s1529_s29, %s1529_s29, %s1063_s5  }
  0x47   : > { %233 = sbr.rel (%p1198_p4) target bundleno = 492 (0x1ec), region = 32  ;;  %s1235_s1 = sand.u32 (!%p1198_p4), 1, %s1043_s13  }
  0x48   : > { %s787_s0 = sshll.u32 (!%p1198_p4), %s1235_s1, 6  ;;  %s236_s20 = scalar_lea.sflag (!%p1198_p4), [#allocation5], %s1235_s1 }
  0x49   : > { %s239_s21 = scalar_lea.vmem (!%p1198_p4), [#allocation4], %s787_s0 }
  0x4c   : > { %1026 = dma.done.wait (%p1143_p8), %s236_s20, 1024  }
  0x4d   : > { %1028 = vsyncadd (%p1143_p8), %s236_s20, 4294966272  ;;  %s244_s4 = sand.u32 1, %s1123_s18   ;;  %s1244_s5 = scalar_lea.vmem [#allocation7], %s787_s0 }
  0x4e   : > { %s245_s11 = scalar_lea.sflag [#allocation8], %s244_s4 }
  0x4f   : > { %1030 = dma.done.wait (%p1143_p8), %s245_s11, 1280  }
  0x50   : > { %1032 = vsyncadd (%p1143_p8), %s245_s11, 4294966016  ;;  %v1250_v0 = vld [vmem:[%s239_s21] sm:$0xff]  ;;  %v1252_v1 = vld [vmem:[%s239_s21 + $0x10] sm:$0xff]  ;;  %s1066_s7 = smov 16   ;;  %s789_s18 = sshll.u32 %s1235_s1, 4  ;;  %vm347_vm0 = vcmask 1047680   ;;  %v311_v30 = vlaneseq }
  0x51   : > { %381 = vrot.lane.b32.xlu0 %v1250_v0, %s1066_s7  ;;  %417 = vrot.lane.b32.xlu1 %v1252_v1, %s1066_s7  ;;  %v1258_v2 = vld [vmem:[%s239_s21 + $0x8] sm:$0xff]  ;;  %v1260_v3 = vld [vmem:[%s239_s21 + $0x18] sm:$0xff]  ;;  %s257_s24 = scalar_lea.vmem [#allocation9], %s789_s18  ;;  %v407_v31 = vrot.slane %v1250_v0, 7  ;;  %v443_v32 = vrot.slane %v1252_v1, 7  ;;  %s1067_s23 = smov 113  }
  0x52   : > { %v1262_v4 = vld [vmem:[%s239_s21 + $0x28] sm:$0xff]  ;;  %v1269_v5 = vld [vmem:[%s239_s21 + $0x20] sm:$0xff]  ;;  %v1271_v6 = vld [vmem:[%s239_s21 + $0x38] sm:$0xff]  ;;  %v408_v33 = vrot.slane %v1258_v2, 7  ;;  %v444_v34 = vrot.slane %v1260_v3, 7  ;;  %v1326_v35 = vshrl.u32 %v311_v30, 7 }
  0x53   : > { %v1273_v7 = vld [vmem:[%s257_s24 + $0x8] sm:$0xff]  ;;  %v1279_v8 = vld [vmem:[%s239_s21 + $0x30] sm:$0xff]  ;;  %v479_v36 = vrot.slane %v1269_v5, 7  ;;  %v480_v37 = vrot.slane %v1262_v4, 7  ;;  %v516_v39 = vrot.slane %v1271_v6, 7  ;;  %v301_v54 = vld [vmem:[%s1244_s5] sm:$0xff] }
  0x54   : > { %v1285_v9 = vld [vmem:[%s257_s24] sm:$0xff]  ;;  %vm374_vm1 = vcmp.lt.s32.totalorder %v1326_v35, 1  ;;  %v515_v38 = vrot.slane %v1279_v8, 7  ;;  %vm332_vm2 = vcmask 130048   ;;  %s802_s29 = smul.u32 24, %s1235_s1  ;;  %vm540_vm3 = vcmp.ge.s32.totalorder %v1326_v35, 1 }
  0x55   : > { %384 = vrot.lane.b32.xlu0 %v1258_v2, %s1066_s7  ;;  %420 = vrot.lane.b32.xlu1 %v1260_v3, %s1066_s7  ;;  %v446_v41 = vsel %vm374_vm1, %v444_v34, %v443_v32  ;;  %v410_v42 = vsel %vm374_vm1, %v408_v33, %v407_v31  ;;  %v445_v44 = vsel %vm374_vm1, %v443_v32, %v444_v34  ;;  %v303_v61 = vld [vmem:[%s1244_s5 + $0x10] sm:$0xff]  ;;  %s803_s30 = smul.u32 384, %s1051_s15  ;;  %s627_s15 = scalar_lea.sflag [#allocation6], %s1235_s1 }
  0x56   : > { %v447_v45 = vsub.f32 %v1252_v1, %v446_v41  ;;  %v409_v46 = vsel %vm374_vm1, %v407_v31, %v408_v33  ;;  %v448_v47 = vsub.f32 %v1260_v3, %v445_v44  ;;  %v482_v48 = vsel %vm374_vm1, %v480_v37, %v479_v36  ;;  %s1407_s28 = scalar_lea.vmem [#allocation10], %s802_s29  ;;  %s1069_s6 = smov [#allocation10]  }
  0x57   : > { %v411_v49 = vsub.f32 %v1250_v0, %v410_v42  ;;  %v412_v50 = vsub.f32 %v1258_v2, %v409_v46  ;;  %v481_v52 = vsel %vm374_vm1, %v479_v36, %v480_v37  ;;  %v483_v53 = vsub.f32 %v1269_v5, %v482_v48  ;;  %v306_v42 = vld [vmem:[%s1244_s5 + $0x28] sm:$0xff]  ;;  %s640_s9 = sshll.u32 %s1407_s28, 4  ;;  %s1458_s8 = scalar_lea.hbm %s1513_s3, %s803_s30  ;;  %s1460_s9 = int_to_ptr.vmem [resolvable:$true] %s640_s9 }
  0x58   : > { %v449_v51 = vand.u32 2147483647, %v447_v45  ;;  %v450_v57 = vand.u32 2147483647, %v448_v47  ;;  %v484_v58 = vsub.f32 %v1262_v4, %v481_v52  ;;  %v518_v59 = vsel %vm374_vm1, %v516_v39, %v515_v38  ;;  %v307_v47 = vld [vmem:[%s1244_s5 + $0x30] sm:$0xff]  ;;  %s975_s26 = scalar_lea.vmem %s1460_s9, 384 }
  0x59   : > { %453 = vrot.lane.b32.xlu0 %v1269_v5, %s1066_s7  ;;  %456 = vrot.lane.b32.xlu1 %v1262_v4, %s1066_s7  ;;  %v413_v60 = vand.u32 2147483647, %v411_v49  ;;  %p976_p8 = scmp.ne.s32.totalorder %s1460_s9, %s975_s26  ;;  %s979_s10 = sshll.u32 %s1069_s6, 4  ;;  %s980_s10 = int_to_ptr.vmem [resolvable:$false] %s979_s10 }
  0x5a   : > { %s981_s0 = scalar_lea.vmem %s980_s10, 768  ;;  %p982_p4 = scmp.lt.s32.totalorder %s1460_s9, %s980_s10 }
  0x5b   : > { %p977_p0 = pnand %p976_p8, %p1147_p9  ;;  %p983_p10 = scmp.lt.s32.totalorder %s981_s0, %s975_s26 }
  0x5d   : > { %489 = vrot.lane.b32.xlu0 %v1279_v8, %s1066_s7  ;;  %492 = vrot.lane.b32.xlu1 %v1271_v6, %s1066_s7  ;;  %p978_p3 = pneg %p977_p0  ;;  %p984_p13 = por %p983_p10, %p982_p4 }
  0x5f   : > { %p985_p12 = pnand %p984_p13, %p978_p3 }
  0x61   : > { %348 = vrot.lane.b32.xlu0 %v1285_v9, %s1066_s7  ;;  %351 = vrot.lane.b32.xlu1 %v1273_v7, %s1066_s7 }
  0xc3   : > { %v382_v10 = vpop.permute.xlu0 %381  ;;  %v418_v11 = vpop.permute.xlu1 %417 }
  0xc4   : > { %v383_v12 = vsel %vm347_vm0, %v382_v10, %v1250_v0  ;;  %v419_v13 = vsel %vm347_vm0, %v418_v11, %v1252_v1  ;;  %v485_v10 = vand.u32 2147483647, %v483_v53  ;;  %v517_v11 = vsel %vm374_vm1, %v515_v38, %v516_v39 }
  0xc5   : > { %387 = vrot.lane.b32.xlu0 %v383_v12, %s1066_s7  ;;  %v486_v12 = vand.u32 2147483647, %v484_v58  ;;  %v322_v58 = vsub.f32 %v1279_v8, %v307_v47 }
  0xc7   : > { %v385_v14 = vpop.permute.xlu0 %384  ;;  %v421_v15 = vpop.permute.xlu1 %420 }
  0xc8   : > { %v386_v16 = vsel %vm347_vm0, %v385_v14, %v1258_v2  ;;  %v422_v17 = vsel %vm347_vm0, %v421_v15, %v1260_v3  ;;  %v520_v14 = vsub.f32 %v1271_v6, %v517_v11  ;;  %v414_v15 = vand.u32 2147483647, %v412_v50 }
  0xc9   : > { %423 = vrot.lane.b32.xlu0 %v419_v13, %s1066_s7  ;;  %389 = vrot.lane.b32.xlu1 %v386_v16, %s1066_s7  ;;  %v519_v13 = vsub.f32 %v1279_v8, %v518_v59  ;;  %v316_v16 = vsub.f32 %v1250_v0, %v301_v54  ;;  %v321_v54 = vsub.f32 %v1262_v4, %v306_v42 }
  0xcb   : > { %v454_v18 = vpop.permute.xlu0 %453  ;;  %v457_v19 = vpop.permute.xlu1 %456  ;;  %v324_v33 = vand.u32 2147483647, %v316_v16  ;;  %v373_v16 = vrot.slane %v1273_v7, 7 }
  0xcc   : > { %v455_v20 = vsel %vm347_vm0, %v454_v18, %v1269_v5  ;;  %v458_v21 = vsel %vm347_vm0, %v457_v19, %v1262_v4  ;;  %v451_v18 = vadd.f32 %v449_v51, %v413_v60  ;;  %v318_v19 = vsub.f32 %v1252_v1, %v303_v61 }
  0xcd   : > { %425 = vrot.lane.b32.xlu1 %v422_v17, %s1066_s7  ;;  %459 = vrot.lane.b32.xlu0 %v455_v20, %s1066_s7  ;;  %v302_v17 = vld [vmem:[%s1244_s5 + $0x8] sm:$0xff]  ;;  %v304_v20 = vld [vmem:[%s1244_s5 + $0x18] sm:$0xff]  ;;  %v333_v49 = vsel %vm332_vm2, %v324_v33, 0.0 }
  0xce   : > { %v317_v31 = vsub.f32 %v1258_v2, %v302_v17  ;;  %v319_v34 = vsub.f32 %v1260_v3, %v304_v20  ;;  %v326_v37 = vand.u32 2147483647, %v318_v19  ;;  %v330_v19 = vand.u32 2147483647, %v322_v58 }
  0xcf   : > { %v490_v22 = vpop.permute.xlu0 %489  ;;  %v493_v23 = vpop.permute.xlu1 %492 }
  0xd0   : > { %v491_v24 = vsel %vm347_vm0, %v490_v22, %v1279_v8  ;;  %v494_v25 = vsel %vm347_vm0, %v493_v23, %v1271_v6  ;;  %v521_v23 = vand.u32 2147483647, %v519_v13  ;;  %v325_v46 = vand.u32 2147483647, %v317_v31 }
  0xd1   : > { %461 = vrot.lane.b32.xlu1 %v458_v21, %s1066_s7  ;;  %495 = vrot.lane.b32.xlu0 %v491_v24, %s1066_s7  ;;  %v522_v24 = vand.u32 2147483647, %v520_v14  ;;  %v327_v50 = vand.u32 2147483647, %v319_v34  ;;  %v334_v52 = vsel %vm332_vm2, %v326_v37, 0.0 }
  0xd2   : > { %v340_v61 = vsel %vm332_vm2, %v325_v46, 0.0  ;;  %v329_v14 = vand.u32 2147483647, %v321_v54 }
  0xd3   : > { %v349_v26 = vpop.permute.xlu0 %348  ;;  %v352_v27 = vpop.permute.xlu1 %351 }
  0xd4   : > { %v350_v28 = vsel %vm347_vm0, %v349_v26, %v1285_v9  ;;  %v353_v29 = vsel %vm347_vm0, %v352_v27, %v1273_v7  ;;  %v305_v26 = vld [vmem:[%s1244_s5 + $0x20] sm:$0xff] }
  0xd5   : > { %497 = vrot.lane.b32.xlu1 %v494_v25, %s1066_s7  ;;  %354 = vrot.lane.b32.xlu0 %v350_v28, %s1066_s7  ;;  %v452_v25 = vadd.f32 %v450_v57, %v414_v15  ;;  %v320_v38 = vsub.f32 %v1269_v5, %v305_v26  ;;  %v372_v15 = vrot.slane %v1285_v9, 7  ;;  %v338_v26 = vsel %vm332_vm2, %v330_v19, 0.0 }
  0xd7   : > { %v488_v32 = vadd.f32 %v486_v12, %v452_v25  ;;  %v328_v53 = vand.u32 2147483647, %v320_v38  ;;  %v343_v25 = vsel %vm332_vm2, %v329_v14, 0.0 }
  0xd9   : > { %356 = vrot.lane.b32.xlu1 %v353_v29, %s1066_s7  ;;  %v487_v29 = vadd.f32 %v485_v10, %v451_v18  ;;  %v524_v41 = vadd.f32 %v522_v24, %v488_v32  ;;  %v341_v10 = vsel %vm332_vm2, %v327_v50, 0.0  ;;  %v336_v13 = vsel %vm332_vm2, %v328_v53, 0.0 }
  0xda   : > { %v1068_v18 = vmov 0.0   ;;  %v376_v24 = vsel %vm374_vm1, %v373_v16, %v372_v15 }
  0xdb   : > { %v523_v36 = vadd.f32 %v521_v23, %v487_v29  ;;  %v528_v48 = vmul.f32 0.25, %v524_v41  ;;  %558 = vst.msk [vmem:[%s1407_s28 + $0x10] sm:$0xff] %vm332_vm2, %v1068_v18  ;;  %556 = vst.msk [vmem:[%s1407_s28] sm:$0xff] %vm332_vm2, %v1068_v18  ;;  %v377_v29 = vsub.f32 %v1285_v9, %v376_v24 }
  0xdc   : > { %557 = vst.msk [vmem:[%s1407_s28 + $0x8] sm:$0xff] %vm332_vm2, %v1068_v18 }
  0xdd   : > { %v527_v45 = vmul.f32 0.25, %v523_v36  ;;  %v543_v57 = vsub.f32 0.0, %v528_v48  ;;  %v379_v36 = vand.u32 2147483647, %v377_v29 }
  0xdf   : > { %v542_v51 = vsub.f32 0.0, %v527_v45  ;;  %v546_v12 = vmul.f32 1.442695, %v543_v57 }
  0xe1   : > { %v544_v11 = vmul.f32 1.442695, %v542_v51 }
  0xe2   : > { %v559_v46 = vld [vmem:[%s1407_s28] sm:$0xff] }
  0xe3   : > { %883 = vpow2.f32 %v544_v11 }
  0xe4   : > { %885 = vpow2.f32 %v546_v12 }
 0x137   : > { %v388_v40 = vpop.permute.xlu0 %387 }
 0x138   : > { %v391_v43 = vsel %vm347_vm0, %v388_v40, %v1250_v0 }
 0x139   : > { %395 = vrot.lane.b32.xlu0 %v391_v43, %s1067_s23 }
 0x13b   : > { %v390_v55 = vpop.permute.xlu1 %389  ;;  %v424_v56 = vpop.permute.xlu0 %423 }
 0x13c   : > { %v392_v62 = vsel %vm347_vm0, %v390_v55, %v1258_v2  ;;  %v427_v63 = vsel %vm347_vm0, %v424_v56, %v1252_v1 }
 0x13d   : > { %397 = vrot.lane.b32.xlu1 %v392_v62, %s1067_s23  ;;  %431 = vrot.lane.b32.xlu0 %v427_v63, %s1067_s23  ;;  %v308_v62 = vld [vmem:[%s1244_s5 + $0x38] sm:$0xff]  ;;  %v335_v63 = vadd.f32 %v334_v52, %v333_v49  ;;  %v792_v49 = vld [vmem:[%s1407_s28 + $0x10] sm:$0xff] }
 0x13e   : > { %v323_v20 = vsub.f32 %v1271_v6, %v308_v62 }
 0x13f   : > { %v426_v21 = vpop.permute.xlu1 %425  ;;  %v460_v22 = vpop.permute.xlu0 %459  ;;  %v337_v23 = vadd.f32 %v336_v13, %v335_v63 }
 0x140   : > { %v428_v27 = vsel %vm347_vm0, %v426_v21, %v1260_v3  ;;  %v463_v28 = vsel %vm347_vm0, %v460_v22, %v1269_v5  ;;  %v342_v22 = vadd.f32 %v341_v10, %v340_v61 }
 0x141   : > { %433 = vrot.lane.b32.xlu1 %v428_v27, %s1067_s23  ;;  %467 = vrot.lane.b32.xlu0 %v463_v28, %s1067_s23  ;;  %v331_v27 = vand.u32 2147483647, %v323_v20  ;;  %v375_v28 = vsel %vm374_vm1, %v372_v15, %v373_v16  ;;  %v339_v32 = vadd.f32 %v338_v26, %v337_v23 }
 0x142   : > { %v344_v31 = vadd.f32 %v343_v25, %v342_v22  ;;  %v378_v33 = vsub.f32 %v1273_v7, %v375_v28 }
 0x143   : > { %v462_v39 = vpop.permute.xlu1 %461  ;;  %v496_v40 = vpop.permute.xlu0 %495  ;;  %v345_v34 = vsel %vm332_vm2, %v331_v27, 0.0  ;;  %v560_v37 = vsel %vm332_vm2, %v339_v32, 0.0 }
 0x144   : > { %v464_v43 = vsel %vm347_vm0, %v462_v39, %v1262_v4  ;;  %v499_v44 = vsel %vm347_vm0, %v496_v40, %v1279_v8  ;;  %v380_v38 = vand.u32 2147483647, %v378_v33  ;;  %v346_v39 = vadd.f32 %v345_v34, %v344_v31  ;;  %v884_v40 = vpop.eup %883 }
 0x145   : > { %469 = vrot.lane.b32.xlu1 %v464_v43, %s1067_s23  ;;  %503 = vrot.lane.b32.xlu0 %v499_v44, %s1067_s23  ;;  %v886_v42 = vpop.eup %885  ;;  %v548_v43 = vmul.f32 %v884_v40, %v379_v36  ;;  %v312_v33 = vand.u32 127, %v311_v30 }
 0x146   : > { %v561_v41 = vsel %vm332_vm2, %v346_v39, 0.0  ;;  %v549_v45 = vmul.f32 %v886_v42, %v380_v38  ;;  %v790_v42 = vld [vmem:[%s1407_s28 + $0x8] sm:$0xff] }
 0x147   : > { %v498_v55 = vpop.permute.xlu1 %497  ;;  %v355_v56 = vpop.permute.xlu0 %354  ;;  %v562_v44 = vadd.f32 %v561_v41, %v560_v37  ;;  %v550_v47 = vsel %vm540_vm3, %v548_v43, 0.0  ;;  %vm529_vm4 = vcmp.ge.s32.totalorder %v312_v33, 1 }
 0x148   : > { %v500_v59 = vsel %vm347_vm0, %v498_v55, %v1271_v6  ;;  %v358_v60 = vsel %vm347_vm0, %v355_v56, %v1285_v9  ;;  %v574_v50 = vsel %vm332_vm2, %v550_v47, 0.0  ;;  %v575_v51 = vsel %vm332_vm2, %v549_v45, 0.0 }
 0x149   : > { %505 = vrot.lane.b32.xlu1 %v500_v59, %s1067_s23  ;;  %362 = vrot.lane.b32.xlu0 %v358_v60, %s1067_s23  ;;  %v563_v48 = vadd.f32 %v562_v44, %v559_v46  ;;  %v576_v52 = vadd.f32 %v575_v51, %v574_v50 }
 0x14b   : > { %v357_v17 = vpop.permute.xlu1 %356  ;;  %564 = vst.msk [vmem:[%s1407_s28] sm:$0xff] %vm332_vm2, %v563_v48  ;;  %v577_v53 = vadd.f32 %v792_v49, %v576_v52 }
 0x14c   : > { %v359_v21 = vsel %vm347_vm0, %v357_v17, %v1273_v7 }
 0x14d   : > { %364 = vrot.lane.b32.xlu1 %v359_v21, %s1067_s23  ;;  %793 = vst.msk [vmem:[%s1407_s28 + $0x10] sm:$0xff] %vm332_vm2, %v577_v53 }
 0x1ab   : > { %v396_v35 = vpop.permute.xlu0 %395 }
 0x1ac   : > { %v401_v57 = vsub.f32 %v1250_v0, %v396_v35 }
 0x1ae   : > { %v403_v63 = vand.u32 2147483647, %v401_v57 }
 0x1af   : > { %v398_v54 = vpop.permute.xlu1 %397  ;;  %v432_v55 = vpop.permute.xlu0 %431 }
 0x1b0   : > { %v437_v56 = vsub.f32 %v1252_v1, %v432_v55  ;;  %v402_v10 = vsub.f32 %v1258_v2, %v398_v54 }
 0x1b2   : > { %v439_v60 = vand.u32 2147483647, %v437_v56  ;;  %v404_v0 = vand.u32 2147483647, %v402_v10 }
 0x1b3   : > { %v434_v58 = vpop.permute.xlu1 %433  ;;  %v468_v59 = vpop.permute.xlu0 %467 }
 0x1b4   : > { %v438_v61 = vsub.f32 %v1260_v3, %v434_v58  ;;  %v473_v62 = vsub.f32 %v1269_v5, %v468_v59  ;;  %v441_v14 = vadd.f32 %v439_v60, %v403_v63 }
 0x1b6   : > { %v475_v11 = vand.u32 2147483647, %v473_v62  ;;  %v440_v15 = vand.u32 2147483647, %v438_v61 }
 0x1b7   : > { %v470_v12 = vpop.permute.xlu1 %469  ;;  %v504_v13 = vpop.permute.xlu0 %503 }
 0x1b8   : > { %v474_v16 = vsub.f32 %v1262_v4, %v470_v12  ;;  %v509_v1 = vsub.f32 %v1279_v8, %v504_v13  ;;  %v477_v17 = vadd.f32 %v475_v11, %v441_v14  ;;  %v442_v3 = vadd.f32 %v440_v15, %v404_v0 }
 0x1ba   : > { %v476_v18 = vand.u32 2147483647, %v474_v16  ;;  %v511_v19 = vand.u32 2147483647, %v509_v1 }
 0x1bb   : > { %v506_v20 = vpop.permute.xlu1 %505  ;;  %v363_v28 = vpop.permute.xlu0 %362 }
 0x1bc   : > { %v513_v21 = vadd.f32 %v511_v19, %v477_v17  ;;  %v510_v5 = vsub.f32 %v1271_v6, %v506_v20  ;;  %v478_v22 = vadd.f32 %v476_v18, %v442_v3  ;;  %v368_v29 = vsub.f32 %v1285_v9, %v363_v28 }
 0x1be   : > { %v525_v2 = vmul.f32 0.25, %v513_v21  ;;  %v512_v23 = vand.u32 2147483647, %v510_v5  ;;  %v370_v32 = vand.u32 2147483647, %v368_v29 }
 0x1bf   : > { %v365_v31 = vpop.permute.xlu1 %364 }
 0x1c0   : > { %v530_v24 = vsub.f32 0.0, %v525_v2  ;;  %v514_v25 = vadd.f32 %v512_v23, %v478_v22  ;;  %v369_v6 = vsub.f32 %v1273_v7, %v365_v31 }
 0x1c2   : > { %v532_v26 = vmul.f32 1.442695, %v530_v24  ;;  %v526_v27 = vmul.f32 0.25, %v514_v25  ;;  %v371_v37 = vand.u32 2147483647, %v369_v6 }
 0x1c4   : > { %887 = vpow2.f32 %v532_v26  ;;  %v531_v4 = vsub.f32 0.0, %v526_v27 }
 0x1c6   : > { %v534_v8 = vmul.f32 1.442695, %v531_v4 }
 0x1c8   : > { %889 = vpow2.f32 %v534_v8 }
 0x1d1   : > { %v888_v34 = vpop.eup %887 }
 0x1d2   : > { %v536_v36 = vmul.f32 %v888_v34, %v370_v32 }
 0x1d4   : > { %v538_v39 = vsel %vm529_vm4, %v536_v36, 0.0 }
 0x1d5   : > { %v890_v38 = vpop.eup %889  ;;  %v567_v9 = vsel %vm332_vm2, %v538_v39, 0.0 }
 0x1d6   : > { %v537_v40 = vmul.f32 %v890_v38, %v371_v37 }
 0x1d8   : > { %v539_v41 = vsel %vm529_vm4, %v537_v40, 0.0 }
 0x1d9   : > { %v568_v7 = vsel %vm332_vm2, %v539_v41, 0.0 }
 0x1da   : > { %v569_v43 = vadd.f32 %v568_v7, %v567_v9 }
 0x1dc   : > { %v570_v30 = vadd.f32 %v790_v42, %v569_v43 }
 0x1de   : > { %791 = vst.msk [vmem:[%s1407_s28 + $0x8] sm:$0xff] %vm332_vm2, %v570_v30 }
 0x1df   : > { %988 = shalt.err (!%p985_p12)
}
 0x1e0   : > { %s989_s20 = scalar_lea.hbm %s1458_s8, 384  ;;  %s993_s11 = scalar_lea.hbm %s1513_s3, 768 }
 0x1e1   : > { %p990_p5 = scmp.ne.s32.totalorder %s1458_s8, %s989_s20  ;;  %p994_p6 = scmp.lt.s32.totalorder %s1458_s8, %s1513_s3 }
 0x1e2   : > { %p995_p7 = scmp.lt.s32.totalorder %s993_s11, %s989_s20 }
 0x1e3   : > { %p991_p1 = pnand %p990_p5, %p1147_p9 }
 0x1e4   : > { %p996_p8 = por %p995_p7, %p994_p6 }
 0x1e5   : > { %p992_p2 = pneg %p991_p1 }
 0x1e7   : > { %p997_p0 = pnand %p996_p8, %p992_p2 }
 0x1e9   : > { %1000 = shalt.err (!%p997_p0)
}
 0x1ea   : > { %s1070_s18 = smov 128   ;;  %s1071_s24 = smov 8  }
 0x1eb   : > { %810 = dma.vmem_to_hbm [thread:$0]  (%p1147_p9), %s1460_s9, 384, %s1458_s8, %s627_s15, %s1070_s18, %s1070_s18, %s1071_s24  }
 0x1ec PF: > { %s655_s23 = sand.u32 1, %s1039_s12   ;;  %p1530_p3 = scmp.ge.s32.totalorder %s1059_s17, 2 }
 0x1ed   : > { %s656_s29 = scalar_lea.sflag [#allocation6], %s655_s23 }
 0x1ee   : > { %p823_p4 = pnand %p1530_p3, %p1154_p11 }
 0x1f0   : > { %p824_p10 = pneg %p823_p4 }
 0x1f2   : > { %1034 = dma.done.wait (%p824_p10), %s656_s29, 384  }
 0x1f3   : > { %1036 = vsyncadd (%p824_p10), %s656_s29, 4294966912  ;;  %s22_s17 = sadd.s32 1, %s1059_s17   ;;  %s1531_s25 = sld [smem:[#allocation15_spill]] }
 0x1f4   : > { %p19_p13 = scmp.ge.s32.totalorder %s22_s17, 4   ;;  %s1532_s1 = sld [smem:[#allocation14_spill]] }
 0x1f5   : > { %s1533_s12 = smov %s1043_s13  ;;  %s1534_s13 = smov %s1047_s14 }
 0x1f6   : > { %s1536_s15 = smov %s1055_s16  ;;  %21 = sbr.rel (!%p19_p13) target bundleno = 11 (0xb), region = 111 }
 0x1f9   : > { %s1535_s14 = smov %s1531_s25 }
 0x1fa   : > { %s1537_s16 = smov %s1532_s1 }
 0x1fb   :  { %661 = vsyncpa [#allocation5], 1 }
 0x1fc   :  { %663 = vsyncpa [#allocation5 + $0x1], 1 }
 0x1fd   :  { %664 = vsyncpa [#allocation8], 1 }
 0x1fe   :  { %666 = vsyncpa [#allocation8 + $0x1], 1 }
 0x1ff   :  { %667 = vsyncpa [#allocation6], 1 }
 0x200   :  { %669 = vsyncpa [#allocation6 + $0x1], 1 }

</bundles_post_ra>
